<compile_context>
chip_gen: v7x
topology: tpu7x:2x2x1
jax: 0.10.0
libtpu: 0.0.40
codegen_flags: <defaults>
</compile_context>

<pallas_src>
import jax
import jax.numpy as jnp
from jax.experimental import pallas as pl
from jax.experimental.pallas import tpu as pltpu

INPUT_DIM = 100
HIDDEN_DIM = 52
OUTPUT_DIM = 1
BN_EPS = 1e-5  # PyTorch BatchNorm1d default


def _interface_a_kernel(x_ref, y_ref, w1_ref, pgb_ref, w2row_ref, b2_ref, loss_ref):
    x = x_ref[...]                                   # [B, INPUT_DIM] f32
    y = y_ref[...]                                   # [B, OUTPUT_DIM] f32

    pgb = pgb_ref[...]                               # [3, HIDDEN]: b1 / gamma / beta
    b1 = pgb[0:1, :]                                 # [1, H]
    gamma = pgb[1:2, :]                              # [1, H]
    beta = pgb[2:3, :]                               # [1, H]

    # ---- Linear(input_dim -> hidden) on the MXU + ReLU ----
    h = jnp.dot(x, w1_ref[...], preferred_element_type=jnp.float32) + b1
    h = jnp.maximum(h, 0.0)

    # ---- BatchNorm1d(hidden), training mode: batch mean / biased variance ----
    mean = jnp.mean(h, axis=0, keepdims=True)        # [1, H]
    centered = h - mean
    var = jnp.mean(centered * centered, axis=0, keepdims=True)
    h_norm = centered * jax.lax.rsqrt(var + BN_EPS) * gamma + beta

    # ---- Linear(hidden -> 1): N=1, so VPU multiply + lane reduce (no MXU pass) ----
    pred = jnp.sum(h_norm * w2row_ref[...], axis=-1, keepdims=True) + b2_ref[0]

    # ---- MSE loss (mean over all elements), scalar result to SMEM ----
    diff = pred - y
    loss_ref[0] = jnp.mean(diff * diff)


def interface_a_forward(x, y, params):
    """Scalar MSE loss of the tiny MLP, matching InterfaceA.forward semantics."""
    w1, b1, gamma, beta, w2, b2 = params
    # Pack the small per-feature params into a single [3, HIDDEN] array (one DMA).
    pgb = jnp.concatenate([b1, gamma, beta], axis=0)          # [3, H]
    w2_row = w2.reshape(1, HIDDEN_DIM)                        # [H,1] -> [1,H]
    b2_s = b2.reshape(OUTPUT_DIM)                             # [1] scalar for SMEM

    full_vmem = lambda a: pl.BlockSpec(a.shape, lambda: (0,) * a.ndim)
    smem_spec = pl.BlockSpec(memory_space=pltpu.MemorySpace.SMEM)

    out = pl.pallas_call(
        _interface_a_kernel,
        out_shape=jax.ShapeDtypeStruct((OUTPUT_DIM,), jnp.float32),
        in_specs=[full_vmem(x), full_vmem(y), full_vmem(w1),
                  full_vmem(pgb), full_vmem(w2_row), smem_spec],
        out_specs=smem_spec,
    )(x, y, w1, pgb, w2_row, b2_s)
    # TODO(synk): if this loss is evaluated over many microbatches, add a leading
    # grid axis (marked "parallel") so one pallas_call amortizes launch overhead.
    return out[0]


def init_params(key):
    """Deterministic parameter init (same shapes as the PyTorch module)."""
    k1, k2, k3, k4 = jax.random.split(key, 4)
    # PyTorch Linear stores weight as [out, in]; we store transposed [in, out].
    bound1 = 1.0 / (INPUT_DIM ** 0.5)
    w1 = jax.random.uniform(k1, (INPUT_DIM, HIDDEN_DIM), jnp.float32,
                            minval=-bound1, maxval=bound1)
    b1 = jax.random.uniform(k2, (1, HIDDEN_DIM), jnp.float32,
                            minval=-bound1, maxval=bound1)
    gamma = jnp.ones((1, HIDDEN_DIM), jnp.float32)   # BatchNorm1d weight init
    beta = jnp.zeros((1, HIDDEN_DIM), jnp.float32)   # BatchNorm1d bias init
    bound2 = 1.0 / (HIDDEN_DIM ** 0.5)
    w2 = jax.random.uniform(k3, (HIDDEN_DIM, OUTPUT_DIM), jnp.float32,
                            minval=-bound2, maxval=bound2)
    b2 = jax.random.uniform(k4, (1, OUTPUT_DIM), jnp.float32,
                            minval=-bound2, maxval=bound2)
    return (w1, b1, gamma, beta, w2, b2)


def _reference_forward(x, y, params):
    w1, b1, gamma, beta, w2, b2 = params
    h = jnp.maximum(x @ w1 + b1, 0.0)
    mean = jnp.mean(h, axis=0, keepdims=True)
    var = jnp.mean((h - mean) ** 2, axis=0, keepdims=True)
    hn = (h - mean) / jnp.sqrt(var + BN_EPS) * gamma + beta
    pred = hn @ w2 + b2
    return jnp.mean((pred - y) ** 2)


if __name__ == "__main__":
    key = jax.random.PRNGKey(0)
    kx, ky, kp = jax.random.split(key, 3)

    B = 8
    x = jax.random.normal(kx, (B, INPUT_DIM), jnp.float32)
    y = jax.random.normal(ky, (B, OUTPUT_DIM), jnp.float32)
    params = init_params(kp)

    loss = interface_a_forward(x, y, params)
    jax.block_until_ready(loss)

    ref = _reference_forward(x, y, params)
    assert jnp.allclose(loss, ref, rtol=1e-4, atol=1e-5), (loss, ref)

    print("KERNEL_OK")
</pallas_src>

<mosaic_0001>
module attributes {stable_mosaic.version = 11 : i64} {
  func.func @_interface_a_kernel(%arg0: memref<8x100xf32, #tpu.memory_space<vmem>>, %arg1: memref<8x1xf32, #tpu.memory_space<vmem>>, %arg2: memref<100x52xf32, #tpu.memory_space<vmem>>, %arg3: memref<3x52xf32, #tpu.memory_space<vmem>>, %arg4: memref<1x52xf32, #tpu.memory_space<vmem>>, %arg5: memref<1xf32, #tpu.memory_space<smem>>, %arg6: memref<1xf32, #tpu.memory_space<smem>>) attributes {dimension_semantics = [], scalar_prefetch = 0 : i64, scratch_operands = 0 : i64, tpu.core_type = #tpu.core_type<tc>} {
    %c0 = arith.constant 0 : index
    %c0_0 = arith.constant 0 : index
    %0 = vector.load %arg0[%c0, %c0_0] : memref<8x100xf32, #tpu.memory_space<vmem>>, vector<8x100xf32>
    %c0_1 = arith.constant 0 : index
    %c0_2 = arith.constant 0 : index
    %1 = vector.load %arg1[%c0_1, %c0_2] : memref<8x1xf32, #tpu.memory_space<vmem>>, vector<8x1xf32>
    %c0_3 = arith.constant 0 : index
    %c0_4 = arith.constant 0 : index
    %2 = vector.load %arg3[%c0_3, %c0_4] : memref<3x52xf32, #tpu.memory_space<vmem>>, vector<3x52xf32>
    %3 = vector.extract_strided_slice %2 {offsets = [0, 0], sizes = [1, 52], strides = [1, 1]} : vector<3x52xf32> to vector<1x52xf32>
    %4 = vector.extract_strided_slice %2 {offsets = [1, 0], sizes = [1, 52], strides = [1, 1]} : vector<3x52xf32> to vector<1x52xf32>
    %5 = vector.extract_strided_slice %2 {offsets = [2, 0], sizes = [1, 52], strides = [1, 1]} : vector<3x52xf32> to vector<1x52xf32>
    %c0_5 = arith.constant 0 : index
    %c0_6 = arith.constant 0 : index
    %6 = vector.load %arg2[%c0_5, %c0_6] : memref<100x52xf32, #tpu.memory_space<vmem>>, vector<100x52xf32>
    %cst = arith.constant dense<0.000000e+00> : vector<8x52xf32>
    %7 = tpu.matmul %0, %6, %cst {dimension_numbers = #tpu.dot_dimension_numbers<[1], [0], [0], [1], [0, 0, 1, 1], [], []>} : vector<8x100xf32>, vector<100x52xf32>, vector<8x52xf32> -> vector<8x52xf32>
    %8 = vector.broadcast %3 : vector<1x52xf32> to vector<8x52xf32>
    %9 = arith.addf %7, %8 : vector<8x52xf32>
    %cst_7 = arith.constant 0.000000e+00 : f32
    %10 = vector.broadcast %cst_7 : f32 to vector<8x52xf32>
    %11 = arith.maximumf %9, %10 : vector<8x52xf32>
    %cst_8 = arith.constant dense<0.000000e+00> : vector<52xf32>
    %12 = vector.multi_reduction <add>, %11, %cst_8 [0] : vector<8x52xf32> to vector<52xf32>
    %13 = vector.shape_cast %12 : vector<52xf32> to vector<1x52xf32>
    %cst_9 = arith.constant 8.000000e+00 : f32
    %14 = vector.broadcast %cst_9 : f32 to vector<1x52xf32>
    %15 = arith.divf %13, %14 : vector<1x52xf32>
    %16 = vector.broadcast %15 : vector<1x52xf32> to vector<8x52xf32>
    %17 = arith.subf %11, %16 : vector<8x52xf32>
    %18 = arith.mulf %17, %17 : vector<8x52xf32>
    %cst_10 = arith.constant dense<0.000000e+00> : vector<52xf32>
    %19 = vector.multi_reduction <add>, %18, %cst_10 [0] : vector<8x52xf32> to vector<52xf32>
    %20 = vector.shape_cast %19 : vector<52xf32> to vector<1x52xf32>
    %cst_11 = arith.constant 8.000000e+00 : f32
    %21 = vector.broadcast %cst_11 : f32 to vector<1x52xf32>
    %22 = arith.divf %20, %21 : vector<1x52xf32>
    %cst_12 = arith.constant 9.99999974E-6 : f32
    %23 = vector.broadcast %cst_12 : f32 to vector<1x52xf32>
    %24 = arith.addf %22, %23 : vector<1x52xf32>
    %25 = math.rsqrt %24 : vector<1x52xf32>
    %26 = vector.broadcast %25 : vector<1x52xf32> to vector<8x52xf32>
    %27 = arith.mulf %17, %26 : vector<8x52xf32>
    %28 = vector.broadcast %4 : vector<1x52xf32> to vector<8x52xf32>
    %29 = arith.mulf %27, %28 : vector<8x52xf32>
    %30 = vector.broadcast %5 : vector<1x52xf32> to vector<8x52xf32>
    %31 = arith.addf %29, %30 : vector<8x52xf32>
    %c0_13 = arith.constant 0 : index
    %c0_14 = arith.constant 0 : index
    %32 = vector.load %arg4[%c0_13, %c0_14] : memref<1x52xf32, #tpu.memory_space<vmem>>, vector<1x52xf32>
    %33 = vector.broadcast %32 : vector<1x52xf32> to vector<8x52xf32>
    %34 = arith.mulf %31, %33 : vector<8x52xf32>
    %cst_15 = arith.constant dense<0.000000e+00> : vector<8xf32>
    %35 = vector.multi_reduction <add>, %34, %cst_15 [1] : vector<8x52xf32> to vector<8xf32>
    %36 = vector.shape_cast %35 : vector<8xf32> to vector<8x1xf32>
    %c0_16 = arith.constant 0 : index
    %37 = memref.load %arg5[%c0_16] : memref<1xf32, #tpu.memory_space<smem>>
    %38 = vector.broadcast %37 : f32 to vector<8x1xf32>
    %39 = arith.addf %36, %38 : vector<8x1xf32>
    %40 = arith.subf %39, %1 : vector<8x1xf32>
    %41 = arith.mulf %40, %40 : vector<8x1xf32>
    %42 = vector.shape_cast %41 : vector<8x1xf32> to vector<1x8x1xf32>
    %cst_17 = arith.constant dense<0.000000e+00> : vector<1xf32>
    %43 = vector.multi_reduction <add>, %42, %cst_17 [1, 2] : vector<1x8x1xf32> to vector<1xf32>
    %44 = vector.shape_cast %43 : vector<1xf32> to vector<1x1x1xf32>
    %45 = vector.extract %44[0, 0, 0] : f32 from vector<1x1x1xf32>
    %cst_18 = arith.constant 8.000000e+00 : f32
    %46 = arith.divf %45, %cst_18 : f32
    %c0_19 = arith.constant 0 : index
    %47 = memref.load %arg6[%c0_19] : memref<1xf32, #tpu.memory_space<smem>>
    memref.store %46, %arg6[%c0_19] : memref<1xf32, #tpu.memory_space<smem>>
    return
  }
}

</mosaic_0001>

<bundles_post_ra>
// kernel: tpu_custom_call.1
= control target key start
LH: loop header
LB: loop body
LE: loop exit
PB: predicated region body
PF: predicated region fallthrough
CT: control target
= control target key end

     0   :  { %v286_v3 = vmov 0.0|0.0   ;;  %vm287_vm0 = vmmov 0   ;;  %v288_v6 = vmov 0.0   ;;  %s394_s0 = inlined_call_operand.vmem [shape: f32[8,100], index: 0, kind: input, shape index: {}]   ;;  %s395_s1 = inlined_call_operand.vmem [shape: f32[8,1], index: 1, kind: input, shape index: {}]   ;;  %s396_s2 = inlined_call_operand.vmem [shape: f32[100,52], index: 2, kind: input, shape index: {}]   ;;  %s397_s3 = inlined_call_operand.vmem [shape: f32[3,52], index: 3, kind: input, shape index: {}]   ;;  %s398_s4 = inlined_call_operand.vmem [shape: f32[1,52], index: 4, kind: input, shape index: {}]   ;;  %s399_s5 = inlined_call_operand.<no memory space> [shape: f32[1], index: 5, kind: input, shape index: {}]   ;;  %s400_s6 = inlined_call_operand.hbm [shape: f32[1], index: 6, kind: output, shape index: {}]  }
   0x1   :  { %v28_v0 = vld [vmem:[%s396_s2] sm:$0xff]  ;;  %v29_v1 = vld [vmem:[%s396_s2 + $0x8] sm:$0xff]  ;;  %v30_v2 = vld [vmem:[%s396_s2 + $0x10] sm:$0xff]  ;;  %248 = vmatprep.subr.bf16.mxu0 %v286_v3  ;;  %245 = vmatprep.mubr.msk.f32.mxu0 %vm287_vm0, %v288_v6 }
   0x2   :  { %v249_v4 = vpack.c.bf16 %v29_v1, %v28_v0  ;;  %v31_v5 = vld [vmem:[%s396_s2 + $0x18] sm:$0xff]  ;;  %v32_v8 = vld [vmem:[%s396_s2 + $0x20] sm:$0xff]  ;;  %v33_v9 = vld [vmem:[%s396_s2 + $0x28] sm:$0xff] }
   0x3   :  { %v252_v7 = vpack.c.bf16 %v31_v5, %v30_v2 }
   0x4   :  { %250 = vmatpush3.bf16.msra.mxu0 %v249_v4 }
   0x5   :  { %251 = vmatprep.subr.bf16.mxu0 %v286_v3 }
   0x6   :  { %12 = vsyncpa [#allocation4], 0  ;;  %v255_v10 = vpack.c.bf16 %v33_v9, %v32_v8  ;;  %v34_v11 = vld [vmem:[%s396_s2 + $0x30] sm:$0xff]  ;;  %v35_v12 = vld [vmem:[%s396_s2 + $0x38] sm:$0xff]  ;;  %vm49_vm1 = vcmask 1043456   ;;  %vm45_vm2 = vcmask 818176   ;;  %v41_v22 = vlaneseq }
   0x7   :  { %v258_v13 = vpack.c.bf16 %v35_v12, %v34_v11  ;;  %v36_v14 = vld [vmem:[%s396_s2 + $0x40] sm:$0xff]  ;;  %v37_v15 = vld [vmem:[%s396_s2 + $0x48] sm:$0xff]  ;;  %v38_v17 = vld [vmem:[%s396_s2 + $0x50] sm:$0xff]  ;;  %vm124_vm3 = vcmask 424960   ;;  %v169_v61 = vstv %s399_s5  ;;  %vm173_vm4 = vcmask 7168   ;;  %s274_s7 = scalar_lea.hbm %s400_s6, 16 }
   0x8   :  { %253 = vmatpush3.bf16.msra.mxu0 %v252_v7  ;;  %v261_v16 = vpack.c.bf16 %v37_v15, %v36_v14  ;;  %v39_v18 = vld [vmem:[%s396_s2 + $0x58] sm:$0xff]  ;;  %v40_v20 = vld [vmem:[%s396_s2 + $0x60] sm:$0xf]  ;;  %v42_v23 = vshrl.u32 %v41_v22, 7  ;;  %p275_p0 = scmp.ne.s32.totalorder %s400_s6, %s274_s7  ;;  %p278_p1 = scmp.lt.u32.totalorder %s274_s7, %s400_s6 }
   0x9   :  { %254 = vmatprep.subr.bf16.mxu0 %v286_v3  ;;  %v264_v19 = vpack.c.bf16 %v39_v18, %v38_v17  ;;  %v25_v21 = vld [vmem:[%s394_s0] sm:$0xff] }
   0xa   :  { %v43_v24 = vsub.s32 0, %v42_v23  ;;  %v27_v25 = vld [vmem:[%s397_s3] sm:$0x7]  ;;  %v149_v50 = vsub.s32 1, %v42_v23  ;;  %v154_v51 = vsub.s32 2, %v42_v23  ;;  %p280_p2 = pnand %p278_p1, %p275_p0 }
   0xb   :  { %v204_v57 = vld [vmem:[%s398_s4] ss:$0 sm:$0xff] }
   0xc   :  { %256 = vmatpush3.bf16.msra.mxu0 %v255_v10  ;;  %v44_v26 = vrot.slane %v27_v25, %v43_v24  ;;  %v150_v52 = vrot.slane %v27_v25, %v149_v50  ;;  %v155_v55 = vrot.slane %v27_v25, %v154_v51  ;;  %v26_v62 = vld [vmem:[%s395_s1] sm:$0xff] }
   0xd   :  { %257 = vmatprep.subr.bf16.mxu0 %v286_v3 }
  0x10   :  { %259 = vmatpush3.bf16.msra.mxu0 %v258_v13 }
  0x11   :  { %260 = vmatprep.subr.bf16.mxu0 %v286_v3 }
  0x14   :  { %262 = vmatpush3.bf16.msra.mxu0 %v261_v16 }
  0x15   :  { %263 = vmatprep.subr.bf16.mxu0 %v286_v3 }
  0x18   :  { %265 = vmatpush3.bf16.msra.mxu0 %v264_v19 }
  0x19   :  { %243 = vmatprep.subr.mxu0 %v288_v6 }
  0x1c   :  { %244 = vmatpush3.msk.msra.mxu0 %vm49_vm1, %v40_v20 }
  0x1d   :  { %246 = vmatmul.mubr.msk.f32.vlgmr.msra.gmra.mrb[0].mxu0 %vm45_vm2, %v25_v21 }
  0xf0   :  { %v119_v27 = vpop.f32.mrb[0].mxu0 }
  0xf1   :  { %v120_v28 = vadd.f32 %v119_v27, %v44_v26  ;;  %v247_v29 = vpop.f32.mrb[1].mxu0 }
  0xf3   :  { %v123_v30 = vmax.f32 %v120_v28, 0.0 }
  0xf5   :  { %v125_v31 = vsel %vm124_vm3, %v123_v30, 0.0 }
  0xf6   :  { %v126_v32 = vrot.slane %v125_v31, 4 }
  0xf8   :  { %v127_v33 = vadd.f32 %v126_v32, %v125_v31 }
  0xfa   :  { %v128_v34 = vrot.slane %v127_v33, 2 }
  0xfc   :  { %v129_v35 = vadd.f32 %v128_v34, %v127_v33 }
  0xfe   :  { %v130_v36 = vrot.slane %v129_v35, 1 }
 0x100   :  { %v131_v37 = vadd.f32 %v130_v36, %v129_v35 }
 0x102   :  { %v133_v38 = vmul.f32 0.125, %v131_v37 }
 0x104   :  { %v134_v39 = vsub.f32 %v123_v30, %v133_v38 }
 0x106   :  { %v135_v40 = vmul.f32 %v134_v39, %v134_v39 }
 0x108   :  { %v136_v41 = vsel %vm124_vm3, %v135_v40, 0.0 }
 0x109   :  { %v137_v42 = vrot.slane %v136_v41, 4 }
 0x10b   :  { %v138_v43 = vadd.f32 %v137_v42, %v136_v41 }
 0x10d   :  { %v139_v44 = vrot.slane %v138_v43, 2 }
 0x10f   :  { %v140_v45 = vadd.f32 %v139_v44, %v138_v43 }
 0x111   :  { %v141_v46 = vrot.slane %v140_v45, 1 }
 0x113   :  { %v142_v47 = vadd.f32 %v141_v46, %v140_v45 }
 0x115   :  { %v143_v48 = vmul.f32 0.125, %v142_v47 }
 0x117   :  { %v144_v49 = vadd.f32 1e-05, %v143_v48 }
 0x119   :  { %272 = vrsqrt.f32 %v144_v49 }
 0x123   :  { %v273_v53 = vpop.eup %272 }
 0x124   :  { %v146_v54 = vmul.f32 %v273_v53, %v134_v39 }
 0x126   :  { %v151_v56 = vmul.f32 %v150_v52, %v146_v54 }
 0x128   :  { %v156_v58 = vadd.f32 %v155_v55, %v151_v56 }
 0x12a   :  { %v164_v59 = vmul.f32 %v204_v57, %v156_v58 }
 0x12c   :  { %v165_v60 = vsel %vm124_vm3, %v164_v59, 0.0 }
 0x12d   :  { %166 = vadd.xlane.f32.xlu0 %v165_v60 }
 0x1ba   :  { %v167_v63 = vpop.xlane.xlu0 %166 }
 0x1bb   :  { %v170_v0 = vadd.f32 %v169_v61, %v167_v63 }
 0x1bd   :  { %v171_v1 = vsub.f32 %v170_v0, %v26_v62 }
 0x1bf   :  { %v172_v2 = vmul.f32 %v171_v1, %v171_v1 }
 0x1c1   :  { %v174_v3 = vsel %vm173_vm4, %v172_v2, 0.0 }
 0x1c2   :  { %175 = vadd.xlane.f32.xlu0 %v174_v3 }
 0x24f   :  { %v176_v4 = vpop.xlane.xlu0 %175 }
 0x250   :  { %v177_v5 = vrot.slane %v176_v4, 4 }
 0x252   :  { %v178_v6 = vadd.f32 %v177_v5, %v176_v4 }
 0x254   :  { %v179_v7 = vrot.slane %v178_v6, 2 }
 0x256   :  { %v180_v8 = vadd.f32 %v179_v7, %v178_v6 }
 0x258   :  { %v181_v9 = vrot.slane %v180_v8, 1 }
 0x25a   :  { %v182_v10 = vadd.f32 %v181_v9, %v180_v8 }
 0x25c   :  { %266 = vpush %v182_v10 }
 0x28d   :  { %s267_s4 = spop %266 }
 0x28e   :  { %s186_s5 = smul.f32 0.125, %s267_s4 }
 0x290   :  { %188 = sst [smem:[#allocation3]] %s186_s5 }
 0x291   :  { %283 = shalt.err (!%p280_p2)
}
 0x292   :  { %s289_s12 = smov [#allocation3]  }
 0x293   :  { %196 = dma.smem_to_hbm %s289_s12, 16, %s400_s6, [#allocation4]  }
 0x294   :  { %284 = dma.done.wait [#allocation4], 16  }
 0x295   :  { %285 = vsyncadd [#allocation4], 4294967280 }
 0x296   :  { %200 = sfence }
 0x297   :  { %201 = vsyncpa [#allocation4], 1 }

</bundles_post_ra>
